<compile_context>
chip_gen: v7x
topology: tpu7x:2x2x1
jax: 0.10.0
libtpu: 0.0.40
codegen_flags: <defaults>
</compile_context>

<pallas_src>
import jax
import jax.numpy as jnp
from jax import lax
from jax.experimental import pallas as pl
from jax.experimental.pallas import tpu as pltpu


# ---------------------------------------------------------------------------
# Kernels
# ---------------------------------------------------------------------------
def _bn_row_params_kernel(sb_ref, x_ref, o_ref):
    """Params per row: sb (tb, 2) f32 [scale | bias]; x/o (tb, ts)."""
    sb = sb_ref[...]
    x = x_ref[...].astype(jnp.float32)
    y = x * sb[:, 0:1] + sb[:, 1:2]          # lane-broadcast of per-row params
    o_ref[...] = y.astype(o_ref.dtype)


def _bn_lane_params_kernel(sb_ref, x_ref, o_ref):
    """Params per lane: sb (2, ts) f32 [row0=scale, row1=bias]; x/o (tb, ts)."""
    x = x_ref[...].astype(jnp.float32)
    scale = sb_ref[0:1, :]                    # (1, ts) -> sublane broadcast
    fbias = sb_ref[1:2, :]
    o_ref[...] = (x * scale + fbias).astype(o_ref.dtype)


# ---------------------------------------------------------------------------
# Block sizing
# ---------------------------------------------------------------------------
def _choose_blocks(rows, lanes, itemsize, target_bytes):
    """Pick (tr, tl) for a (rows, lanes) array: ~target_bytes per block,
    lane-dense, obeying the (packing, 128)-or-full-dim block constraint."""
    row_mult = max(8, 32 // itemsize)         # 8 f32, 16 bf16, 32 int8/fp8
    min_rows = min(rows, row_mult)

    # Lane (last) dim: full slab if it fits, else multiples of 128.
    if min_rows * lanes * itemsize <= target_bytes:
        tl = lanes
    else:
        tl = max(128, (target_bytes // (min_rows * itemsize)) // 128 * 128)
        tl = min(tl, lanes)

    # Sublane (second-to-last) dim: fill remaining budget, packing-multiple
    # unless we take the full extent.
    rows_budget = max(1, target_bytes // (tl * itemsize))
    if rows <= max(rows_budget, row_mult):
        tr = rows
    else:
        tr = min(rows, max(row_mult, (rows_budget // row_mult) * row_mult))

    # Guarantee >=2 blocks on at least one axis for inputs large enough to
    # matter, so both v7x TensorCores can stream concurrently.
    total = rows * lanes * itemsize
    if total >= (1 << 20) and tr >= rows and tl >= lanes:
        if lanes >= 256:
            tl = max(128, ((lanes + 1) // 2) // 128 * 128)
        elif rows >= 2 * row_mult:
            tr = max(row_mult, ((rows + 1) // 2) // row_mult * row_mult)

    return tr, tl


# ---------------------------------------------------------------------------
# Wrapper
# ---------------------------------------------------------------------------
def frozen_batch_norm_2d(x, weight, bias, running_mean, running_var,
                         eps=1e-05, *, target_bytes=4 * 1024 * 1024):
    N, C, H, W = x.shape
    S = H * W
    itemsize = x.dtype.itemsize
    vmem_limit = 48 * 1024 * 1024             # safe ceiling on v7x (64 MiB VMEM)

    # Fold the four frozen buffers into per-channel scale / fused bias (f32).
    w32 = weight.astype(jnp.float32)
    b32 = bias.astype(jnp.float32)
    rm32 = running_mean.astype(jnp.float32)
    rv32 = running_var.astype(jnp.float32)
    scale = w32 * lax.rsqrt(rv32 + jnp.float32(eps))
    fused_bias = b32 - rm32 * scale

    if S % 128 == 0:
        # ---- lane-dense spatial slab: (N*C, H*W), per-row params ----------
        R = N * C
        sb = jnp.stack([scale, fused_bias], axis=-1)               # (C, 2)
        sb = jnp.broadcast_to(sb[None], (N, C, 2)).reshape(R, 2)   # (R, 2)
        x2 = x.reshape(R, S)                                       # free reshape

        tb, ts = _choose_blocks(R, S, itemsize, target_bytes)
        grid = (pl.cdiv(R, tb), pl.cdiv(S, ts))                    # rows outer

        out2 = pl.pallas_call(
            _bn_row_params_kernel,
            out_shape=jax.ShapeDtypeStruct((R, S), x.dtype),
            grid=grid,
            in_specs=[
                pl.BlockSpec((tb, 2), lambda i, j: (i, 0)),        # fused params
                pl.BlockSpec((tb, ts), lambda i, j: (i, j)),       # x tile
            ],
            out_specs=pl.BlockSpec((tb, ts), lambda i, j: (i, j)),
            compiler_params=pltpu.CompilerParams(
                dimension_semantics=("parallel", "parallel"),
                vmem_limit_bytes=vmem_limit,
            ),
            cost_estimate=pl.CostEstimate(
                flops=2 * R * S,
                transcendentals=0,
                bytes_accessed=2 * R * S * itemsize + 8 * R,
            ),
        )(sb, x2)
        return out2.reshape(N, C, H, W)

    # ---- small / lane-unfriendly spatial dims (7x7, 14x14, ...): ----------
    # flatten channels into the lane axis so loads/stores stay lane-dense.
    CS = C * S
    sb = jnp.stack(
        [
            jnp.broadcast_to(scale[:, None], (C, S)).reshape(CS),
            jnp.broadcast_to(fused_bias[:, None], (C, S)).reshape(CS),
        ],
        axis=0,
    )                                                              # (2, CS)
    x2 = x.reshape(N, CS)                                          # free reshape

    tb, ts = _choose_blocks(N, CS, itemsize, target_bytes)
    # Lane axis outer so the per-lane params stay resident across the inner
    # (row) loop and are only re-DMA'd when the lane block changes.
    grid = (pl.cdiv(CS, ts), pl.cdiv(N, tb))

    out2 = pl.pallas_call(
        _bn_lane_params_kernel,
        out_shape=jax.ShapeDtypeStruct((N, CS), x.dtype),
        grid=grid,
        in_specs=[
            pl.BlockSpec((2, ts), lambda j, i: (0, j)),            # fused params
            pl.BlockSpec((tb, ts), lambda j, i: (i, j)),           # x tile
        ],
        out_specs=pl.BlockSpec((tb, ts), lambda j, i: (i, j)),
        compiler_params=pltpu.CompilerParams(
            dimension_semantics=("parallel", "parallel"),
            vmem_limit_bytes=vmem_limit,
        ),
        cost_estimate=pl.CostEstimate(
            flops=2 * N * CS,
            transcendentals=0,
            bytes_accessed=2 * N * CS * itemsize + 8 * CS,
        ),
    )(sb, x2)
    return out2.reshape(N, C, H, W)


# ---------------------------------------------------------------------------
# Self-test
# ---------------------------------------------------------------------------
def _reference(x, weight, bias, running_mean, running_var, eps=1e-05):
    """Pure-JAX mirror of the PyTorch FrozenBatchNorm2d.forward (f32 math)."""
    w = weight.reshape(1, -1, 1, 1).astype(jnp.float32)
    b = bias.reshape(1, -1, 1, 1).astype(jnp.float32)
    rv = running_var.reshape(1, -1, 1, 1).astype(jnp.float32)
    rm = running_mean.reshape(1, -1, 1, 1).astype(jnp.float32)
    scale = w * lax.rsqrt(rv + jnp.float32(eps))
    fbias = b - rm * scale
    return (x.astype(jnp.float32) * scale + fbias).astype(x.dtype)


def _make_params(key, C):
    k_w, k_b, k_rm, k_rv = jax.random.split(key, 4)
    weight = 1.0 + 0.1 * jax.random.normal(k_w, (C,), dtype=jnp.float32)
    bias = 0.1 * jax.random.normal(k_b, (C,), dtype=jnp.float32)
    running_mean = 0.1 * jax.random.normal(k_rm, (C,), dtype=jnp.float32)
    running_var = jnp.abs(1.0 + 0.1 * jax.random.normal(k_rv, (C,), dtype=jnp.float32))
    return weight, bias, running_mean, running_var


def _check(key, shape, dtype, atol, rtol, **kw):
    k_x, k_p = jax.random.split(key)
    N, C, H, W = shape
    x = jax.random.normal(k_x, shape, dtype=jnp.float32).astype(dtype)
    weight, bias, running_mean, running_var = _make_params(k_p, C)

    out = frozen_batch_norm_2d(x, weight, bias, running_mean, running_var, **kw)
    out = jax.block_until_ready(out)
    ref = _reference(x, weight, bias, running_mean, running_var)

    assert out.shape == x.shape and out.dtype == x.dtype
    assert jnp.allclose(out.astype(jnp.float32), ref.astype(jnp.float32),
                        atol=atol, rtol=rtol), f"mismatch for shape={shape} dtype={dtype}"


if __name__ == "__main__":
    root = jax.random.PRNGKey(0)
    k1, k2, k3, k4 = jax.random.split(root, 4)

    # 1) Base case (matches reported input_shapes): f32, lane-dense path.
    _check(k1, (2, 4, 16, 16), jnp.float32, atol=1e-5, rtol=1e-5)

    # 2) bf16 input (sublane packing factor 16), lane-dense path.
    _check(k2, (2, 8, 16, 16), jnp.bfloat16, atol=2e-2, rtol=2e-2)

    # 3) Small / lane-unfriendly spatial dims (7x7) -> (N, C*H*W) layout.
    _check(k3, (2, 4, 7, 7), jnp.float32, atol=1e-5, rtol=1e-5)

    # 4) Multi-block grid with partial boundary blocks on both axes
    #    (tiny tile budget forces tb=8 over R=10 and ts=256 over S=384).
    _check(k4, (2, 5, 16, 24), jnp.float32, atol=1e-5, rtol=1e-5,
           target_bytes=8 * 1024)

    print("KERNEL_OK")
</pallas_src>

<mosaic_0001>
module attributes {stable_mosaic.version = 11 : i64} {
  func.func @_bn_row_params_kernel(%arg0: i32, %arg1: i32, %arg2: memref<8x2xf32, #tpu.memory_space<vmem>>, %arg3: memref<8x256xf32, #tpu.memory_space<vmem>>, %arg4: memref<8x256xf32, #tpu.memory_space<vmem>>) attributes {dimension_semantics = [#tpu.dimension_semantics<parallel>, #tpu.dimension_semantics<parallel>], iteration_bounds = array<i64: 1, 1>, scalar_prefetch = 0 : i64, scratch_operands = 0 : i64, tpu.core_type = #tpu.core_type<tc>, window_params = [{transform_indices = @transform_0, window_bounds = array<i64: 8, 2>}, {transform_indices = @transform_1, window_bounds = array<i64: 8, 256>}, {transform_indices = @transform_2, window_bounds = array<i64: 8, 256>}]} {
    %c0 = arith.constant 0 : index
    %c0_0 = arith.constant 0 : index
    %0 = vector.load %arg2[%c0, %c0_0] : memref<8x2xf32, #tpu.memory_space<vmem>>, vector<8x2xf32>
    %c0_1 = arith.constant 0 : index
    %c0_2 = arith.constant 0 : index
    %1 = vector.load %arg3[%c0_1, %c0_2] : memref<8x256xf32, #tpu.memory_space<vmem>>, vector<8x256xf32>
    %2 = vector.extract_strided_slice %0 {offsets = [0, 0], sizes = [8, 1], strides = [1, 1]} : vector<8x2xf32> to vector<8x1xf32>
    %3 = vector.broadcast %2 : vector<8x1xf32> to vector<8x256xf32>
    %4 = arith.mulf %1, %3 : vector<8x256xf32>
    %5 = vector.extract_strided_slice %0 {offsets = [0, 1], sizes = [8, 1], strides = [1, 1]} : vector<8x2xf32> to vector<8x1xf32>
    %6 = vector.broadcast %5 : vector<8x1xf32> to vector<8x256xf32>
    %7 = arith.addf %4, %6 : vector<8x256xf32>
    %c0_3 = arith.constant 0 : index
    %c0_4 = arith.constant 0 : index
    %8 = vector.load %arg4[%c0_3, %c0_4] : memref<8x256xf32, #tpu.memory_space<vmem>>, vector<8x256xf32>
    tpu.vector_store %arg4[%c0_3, %c0_4], %7 {strides = array<i32>} : memref<8x256xf32, #tpu.memory_space<vmem>>, vector<8x256xf32>,
    return
  }
  func.func @transform_0(%arg0: i32, %arg1: i32) -> (i32, i32) {
    %c0_i32 = arith.constant 0 : i32
    %c0_i32_0 = arith.constant 0 : i32
    return %arg0, %c0_i32 : i32, i32
  }
  func.func @transform_1(%arg0: i32, %arg1: i32) -> (i32, i32) {
    %c0_i32 = arith.constant 0 : i32
    return %arg0, %arg1 : i32, i32
  }
  func.func @transform_2(%arg0: i32, %arg1: i32) -> (i32, i32) {
    %c0_i32 = arith.constant 0 : i32
    return %arg0, %arg1 : i32, i32
  }
}

</mosaic_0001>

<bundles_post_ra>
// kernel: tpu_custom_call.1
= control target key start
LH: loop header
LB: loop body
LE: loop exit
PB: predicated region body
PF: predicated region fallthrough
CT: control target
= control target key end

     0   :  { %7 = vsyncpa [#allocation3], 0  ;;  %s157_s0 = inlined_call_operand.vmem [shape: f32[8,2], index: 0, kind: input, shape index: {}]   ;;  %s158_s1 = inlined_call_operand.hbm [shape: f32[8,256], index: 1, kind: input, shape index: {}]   ;;  %s159_s2 = inlined_call_operand.hbm [shape: f32[8,256], index: 2, kind: output, shape index: {}]  }
   0x1   :  { %8 = vsyncpa [#allocation4], 0  ;;  %s111_s9 = smov [#allocation2]   ;;  %s63_s13 = scalar_lea.hbm %s158_s1, 256 }
   0x2   :  { %s17_s10 = sshll.u32 %s111_s9, 4  ;;  %p64_p0 = scmp.ne.s32.totalorder %s158_s1, %s63_s13  ;;  %s18_s10 = int_to_ptr.vmem [resolvable:$true] %s17_s10 }
   0x3   :  { %p67_p1 = scmp.lt.u32.totalorder %s63_s13, %s158_s1 }
   0x5   :  { %p69_p2 = pnand %p67_p1, %p64_p0 }
   0x7   :  { %72 = shalt.err (!%p69_p2)
}
   0x8   :  { %s73_s18 = scalar_lea.vmem %s18_s10, 256  ;;  %p78_p4 = scmp.lt.s32.totalorder %s18_s10, %s18_s10 }
   0x9   :  { %p74_p3 = scmp.ne.s32.totalorder %s18_s10, %s73_s18  ;;  %p79_p5 = scmp.lt.s32.totalorder %s73_s18, %s73_s18 }
   0xb   :  { %p80_p6 = por %p79_p5, %p78_p4 }
   0xd   :  { %p81_p7 = pnand %p80_p6, %p74_p3 }
   0xf   :  { %84 = shalt.err (!%p81_p7)
}
  0x10   :  { %20 = dma.hbm_to_vmem [thread:$0]  %s158_s1, 256, %s18_s10, [#allocation3]  }
  0x11   :  { %107 = dma.done.wait [#allocation3], 256  }
  0x12   :  { %108 = vsyncadd [#allocation3], 4294967040  ;;  %v112_v0 = vmov 0   ;;  %v24_v1 = vld [vmem:[%s157_s0] sm:$0xff]  ;;  %v113_v2 = vmov 1   ;;  %v26_v5 = vld [vmem:[#allocation2 + $0x8] sm:$0xff] }
  0x13   :  { %61 = vset.pattern.permute.xlu0 %v112_v0  ;;  %v25_v4 = vld [vmem:[#allocation2] sm:$0xff]  ;;  %s114_s23 = smov [#allocation5]  }
  0x14   :  { %29 = vperm.xlu0 %61, %v24_v1   ;;  %s48_s24 = sshll.u32 %s114_s23, 4  ;;  %s49_s24 = int_to_ptr.vmem [resolvable:$true] %s48_s24 }
  0x15   :  { %s85_s1 = scalar_lea.vmem %s49_s24, 256  ;;  %p90_p9 = scmp.lt.s32.totalorder %s49_s24, %s49_s24 }
  0x16   :  { %p86_p8 = scmp.ne.s32.totalorder %s49_s24, %s85_s1  ;;  %p91_p10 = scmp.lt.s32.totalorder %s85_s1, %s85_s1 }
  0x18   :  { %62 = vset.pattern.permute.xlu0 %v113_v2  ;;  %p92_p11 = por %p91_p10, %p90_p9 }
  0x19   :  { %35 = vperm.xlu0 %62, %v24_v1  }
  0x1a   :  { %p93_p12 = pnand %p92_p11, %p86_p8 }
  0x93   :  { %v30_v3 = vpop.permute.xlu0 %29 }
  0x94   :  { %v32_v6 = vmul.f32 %v30_v3, %v25_v4  ;;  %v33_v7 = vmul.f32 %v30_v3, %v26_v5 }
  0x98   :  { %v36_v8 = vpop.permute.xlu0 %35 }
  0x99   :  { %v38_v9 = vadd.f32 %v36_v8, %v32_v6  ;;  %v39_v10 = vadd.f32 %v36_v8, %v33_v7 }
  0x9b   :  { %40 = vst [vmem:[#allocation5] sm:$0xff] %v38_v9  ;;  %41 = vst [vmem:[#allocation5 + $0x8] sm:$0xff] %v39_v10 }
  0x9c   :  { %96 = shalt.err (!%p93_p12)
}
  0x9d   :  { %s97_s26 = scalar_lea.hbm %s159_s2, 256 }
  0x9e   :  { %p98_p13 = scmp.ne.s32.totalorder %s159_s2, %s97_s26  ;;  %p101_p0 = scmp.lt.u32.totalorder %s97_s26, %s159_s2 }
  0xa0   :  { %p103_p1 = pnand %p101_p0, %p98_p13 }
  0xa2   :  { %106 = shalt.err (!%p103_p1)
}
  0xa3   :  { %51 = dma.vmem_to_hbm [thread:$0]  %s49_s24, 256, %s159_s2, [#allocation4]  }
  0xa4   :  { %109 = dma.done.wait [#allocation4], 256  }
  0xa5   :  { %110 = vsyncadd [#allocation4], 4294967040 }
  0xa6   :  { %55 = vsyncpa [#allocation3], 1 }
  0xa7   :  { %56 = vsyncpa [#allocation4], 1 }

</bundles_post_ra>
